<compile_context>
chip_gen: v5e
topology: v5e:2x2
jax: 0.10.0
libtpu: 0.0.40
codegen_flags: <defaults>
</compile_context>

<pallas_src>
import math

import jax
import jax.numpy as jnp
from jax.experimental import pallas as pl
from jax.experimental.pallas import tpu as pltpu


# ----------------------------- Pallas kernel ------------------------------- #

def _sinusoidal_kernel(t_ref, c_ref, o_ref):
    # t_ref : (TB, 1)   float32 timesteps for this batch tile
    # c_ref : (2, dim)  row 0 = full-width frequencies, row 1 = cos-selector
    # o_ref : (TB, dim) float32 output embeddings
    c = c_ref[...]
    freqs = c[0:1, :]                  # (1, dim)
    is_cos = c[1:2, :] > 0.5           # (1, dim) bool
    args = t_ref[...] * freqs          # (TB, dim) — VPU broadcast multiply
    # Single contiguous full-tile store; sin/cos both go to the EUP, the
    # select is a cheap VPU op (no lane-axis concatenate / XLU shuffle).
    o_ref[...] = jnp.where(is_cos, jnp.cos(args), jnp.sin(args))


# ------------------------------ wrapper ------------------------------------ #

def sinusoidal_position_embeddings(time, dim, *, max_tile_elems=1 << 20):
    """time: (B,) int or float timesteps -> (B, dim) float32 embeddings."""
    assert dim % 2 == 0, "SinusoidalPositionEmbeddings requires an even dim"
    assert dim >= 4, "dim must be >= 4 (dim == 2 divides by zero, as in PyTorch)"
    half = dim // 2

    t = time.astype(jnp.float32).reshape(-1, 1)                    # (B, 1)
    B = t.shape[0]

    # Invariant per-lane constants, computed once (never per grid step):
    #   freqs_full[k] = exp(-(k mod half) * ln(1e4)/(half-1))
    #   is_cos[k]     = 1.0 for the cos half (k >= half), else 0.0
    k = jnp.arange(dim, dtype=jnp.float32)
    k_half = jnp.where(k < half, k, k - half)
    freqs_full = jnp.exp(k_half * (-math.log(10000.0) / (half - 1)))
    is_cos = (k >= half).astype(jnp.float32)
    consts = jnp.stack([freqs_full, is_cos], axis=0)               # (2, dim)

    # --- tile selection ----------------------------------------------------
    # Largest batch tile (multiple of 8) whose double-buffered output stays
    # well under scoped VMEM on every generation (4 MiB/buffer default cap).
    max_tb = max(8, ((max_tile_elems // dim) // 8) * 8)
    B_pad8 = ((B + 7) // 8) * 8
    tb = B_pad8 if B_pad8 <= max_tb else max_tb                    # 1 step if it fits
    n_steps = pl.cdiv(B_pad8, tb)
    B_pad = n_steps * tb
    if B_pad != B:
        t = jnp.pad(t, ((0, B_pad - B), (0, 0)))

    cost = pl.CostEstimate(
        flops=2 * B_pad * dim,                  # mul + select
        transcendentals=2 * B_pad * dim,        # sin + cos per lane
        bytes_accessed=B_pad * dim * 4 + B_pad * 4 + dim * 8,
    )

    out = pl.pallas_call(
        _sinusoidal_kernel,
        out_shape=jax.ShapeDtypeStruct((B_pad, dim), jnp.float32),
        grid=(n_steps,),
        in_specs=[
            pl.BlockSpec((tb, 1), lambda i: (i, 0)),
            pl.BlockSpec((2, dim), lambda i: (0, 0)),               # constant row
        ],
        out_specs=pl.BlockSpec((tb, dim), lambda i: (i, 0)),
        compiler_params=pltpu.CompilerParams(
            dimension_semantics=("parallel",)),                     # shards TCs on v7x
        cost_estimate=cost,
    )(t, consts)
    return out[:B]


class SinusoidalPositionEmbeddings:
    """JAX/Pallas equivalent of the PyTorch nn.Module."""

    def __init__(self, dim):
        self.dim = dim

    def __call__(self, time):
        return sinusoidal_position_embeddings(time, self.dim)

    forward = __call__


# ------------------------------- demo -------------------------------------- #

if __name__ == "__main__":
    key = jax.random.PRNGKey(0)
    B, dim = 2, 32
    t = jax.random.randint(key, (B,), 0, 1000)                     # long timesteps

    mod = SinusoidalPositionEmbeddings(dim)
    out = jax.block_until_ready(mod.forward(t))

    # Pure-JAX reference matching PyTorch exactly (divisor = half_dim - 1,
    # cat(sin, cos) on the last axis).
    half = dim // 2
    freqs = jnp.exp(jnp.arange(half, dtype=jnp.float32)
                    * (-math.log(10000.0) / (half - 1)))
    args = t.astype(jnp.float32)[:, None] * freqs[None, :]
    ref = jnp.concatenate([jnp.sin(args), jnp.cos(args)], axis=-1)

    assert out.shape == (B, dim) and out.dtype == jnp.float32
    assert jnp.allclose(out, ref, atol=1e-5, rtol=1e-5)
    print("KERNEL_OK")
</pallas_src>

<mosaic_0001>
module attributes {stable_mosaic.version = 11 : i64} {
  func.func @_sinusoidal_kernel(%arg0: i32, %arg1: memref<8x1xf32, #tpu.memory_space<vmem>>, %arg2: memref<2x32xf32, #tpu.memory_space<vmem>>, %arg3: memref<8x32xf32, #tpu.memory_space<vmem>>) attributes {dimension_semantics = [#tpu.dimension_semantics<parallel>], iteration_bounds = array<i64: 1>, scalar_prefetch = 0 : i64, scratch_operands = 0 : i64, tpu.core_type = #tpu.core_type<tc>, window_params = [{transform_indices = @transform_0, window_bounds = array<i64: 8, 1>}, {pipeline_mode = #tpu.pipeline_mode<synchronous>, transform_indices = @transform_1, window_bounds = array<i64: 2, 32>}, {transform_indices = @transform_2, window_bounds = array<i64: 8, 32>}]} {
    %c0 = arith.constant 0 : index
    %c0_0 = arith.constant 0 : index
    %0 = vector.load %arg2[%c0, %c0_0] : memref<2x32xf32, #tpu.memory_space<vmem>>, vector<2x32xf32>
    %1 = vector.extract_strided_slice %0 {offsets = [0, 0], sizes = [1, 32], strides = [1, 1]} : vector<2x32xf32> to vector<1x32xf32>
    %2 = vector.extract_strided_slice %0 {offsets = [1, 0], sizes = [1, 32], strides = [1, 1]} : vector<2x32xf32> to vector<1x32xf32>
    %cst = arith.constant 5.000000e-01 : f32
    %3 = vector.broadcast %cst : f32 to vector<1x32xf32>
    %4 = arith.cmpf ogt, %2, %3 : vector<1x32xf32>
    %c0_1 = arith.constant 0 : index
    %c0_2 = arith.constant 0 : index
    %5 = vector.load %arg1[%c0_1, %c0_2] : memref<8x1xf32, #tpu.memory_space<vmem>>, vector<8x1xf32>
    %6 = vector.broadcast %5 : vector<8x1xf32> to vector<8x32xf32>
    %7 = vector.broadcast %1 : vector<1x32xf32> to vector<8x32xf32>
    %8 = arith.mulf %6, %7 : vector<8x32xf32>
    %9 = math.cos %8 : vector<8x32xf32>
    %10 = math.sin %8 : vector<8x32xf32>
    %11 = vector.shape_cast %4 : vector<1x32xi1> to vector<1x32xi1>
    %12 = vector.broadcast %11 : vector<1x32xi1> to vector<8x32xi1>
    %13 = arith.select %12, %9, %10 : vector<8x32xi1>, vector<8x32xf32>
    %c0_3 = arith.constant 0 : index
    %c0_4 = arith.constant 0 : index
    %14 = vector.load %arg3[%c0_3, %c0_4] : memref<8x32xf32, #tpu.memory_space<vmem>>, vector<8x32xf32>
    tpu.vector_store %arg3[%c0_3, %c0_4], %13 {strides = array<i32>} : memref<8x32xf32, #tpu.memory_space<vmem>>, vector<8x32xf32>,
    return
  }
  func.func @transform_0(%arg0: i32) -> (i32, i32) {
    %c0_i32 = arith.constant 0 : i32
    %c0_i32_0 = arith.constant 0 : i32
    return %arg0, %c0_i32 : i32, i32
  }
  func.func @transform_1(%arg0: i32) -> (i32, i32) {
    %c0_i32 = arith.constant 0 : i32
    %c0_i32_0 = arith.constant 0 : i32
    %c0_i32_1 = arith.constant 0 : i32
    return %c0_i32, %c0_i32_0 : i32, i32
  }
  func.func @transform_2(%arg0: i32) -> (i32, i32) {
    %c0_i32 = arith.constant 0 : i32
    %c0_i32_0 = arith.constant 0 : i32
    return %arg0, %c0_i32 : i32, i32
  }
}

</mosaic_0001>

<bundles_post_ra>
// kernel: tpu_custom_call.1
= control target key start
LH: loop header
LB: loop body
LE: loop exit
PB: predicated region body
PF: predicated region fallthrough
CT: control target
= control target key end

     0   :  { %v394_v1 = vmov 0   ;;  %s499_s0 = inlined_call_operand.vmem [shape: f32[8,1], index: 0, kind: input, shape index: {}]   ;;  %s500_s1 = inlined_call_operand.vmem [shape: f32[2,32], index: 1, kind: input, shape index: {}]   ;;  %s501_s2 = inlined_call_operand.hbm [shape: f32[8,32], index: 2, kind: output, shape index: {}]  }
   0x1   :  { %v14_v0 = vld [vmem:[%s499_s0] sm:$0xff]  ;;  %367 = vset.pattern.permute.xlu0 %v394_v1 }
   0x2   :  { %17 = vperm.xlu0 %367, %v14_v0  }
   0x3   :  { %7 = vsyncpa [#allocation3], 0  ;;  %v424_v2 = vld [vmem:[%s500_s1] sm:$0x3]  ;;  %v395_v17 = vmov 683565275  }
   0x4   :  { %v20_v3 = vperm.slane %v424_v2, 0  ;;  %v396_v19 = vmov 2475754826   ;;  %v397_v22 = vmov 2131351028   ;;  %vm13_vm14 = vcmp.gt.f32.partialorder %v424_v2, 0.5 }
   0x5   :  { %v398_v25 = vmov 2102212464   ;;  %v399_v28 = vmov 920167782   ;;  %v400_v31 = vmov 1326507024  }
   0x6   :  { %s401_s0 = smov [#allocation2]   ;;  %s344_s15 = sshll.u32 %s501_s2, 4  ;;  %s345_s15 = int_to_ptr.hbm [resolvable:$true] %s344_s15 }
   0x7   :  { %s342_s1 = sshll.u32 %s401_s0, 4  ;;  %s343_s1 = int_to_ptr.vmem [resolvable:$true] %s342_s1 }
  0x74   :  { %v18_v4 = vpop.permute.xlu0 %17 }
  0x75   :  { %v427_v5 = vmul.f32 %v20_v3, %v18_v4 }
  0x77   :  { %v25_v6 = vand.u32 2139095040, %v427_v5  ;;  %v22_v9 = vand.u32 2147483647, %v427_v5  ;;  %vm24_vm12 = vcmp.lt.s32.totalorder %v427_v5, 0 }
  0x79   :  { %v26_v7 = vshrl.u32 %v25_v6, 23  ;;  %v29_v11 = vand.u32 8388607, %v22_v9  ;;  %vm23_vm13 = vcmp.le.f32.partialorder %v22_v9, 0.7853982  ;;  %v331_v9 = vsel %vm13_vm14, 1, %v394_v1 }
  0x7b   :  { %v353_v8 = vadd.s32 4294967169, %v26_v7  ;;  %v30_v15 = vor.u32 8388608, %v29_v11 }
  0x7d   :  { %v32_v10 = vadd.s32 1, %v353_v8  ;;  %v444_v38 = vshll.u32 %v30_v15, 8 }
  0x7f   :  { %vm33_vm0 = vcmp.gt.s32.totalorder %v32_v10, 0  ;;  %v71_v47 = vand.u32 65535, %v444_v38  ;;  %v72_v48 = vshrl.u32 %v444_v38, 16 }
  0x80   :  { %v34_v12 = vsel %vm33_vm0, %v32_v10, 0 }
  0x81   :  { %v36_v13 = vand.u32 31, %v34_v12  ;;  %v435_v16 = vshrl.u32 %v34_v12, 5 }
  0x83   :  { %v433_v14 = vsub.s32 32, %v36_v13  ;;  %v39_v18 = vshll.u32 %v395_v17, %v36_v13  ;;  %v42_v20 = vshll.u32 %v396_v19, %v36_v13  ;;  %v45_v24 = vshll.u32 %v397_v22, %v36_v13 }
  0x84   :  { %v48_v27 = vshll.u32 %v398_v25, %v36_v13  ;;  %v51_v30 = vshll.u32 %v399_v28, %v36_v13  ;;  %vm54_vm1 = vcmp.lt.s32.totalorder %v435_v16, 1  ;;  %vm57_vm2 = vcmp.lt.s32.totalorder %v435_v16, 4 }
  0x85   :  { %v40_v21 = vshrl.u32 %v396_v19, %v433_v14  ;;  %v43_v23 = vshrl.u32 %v397_v22, %v433_v14  ;;  %v46_v26 = vshrl.u32 %v398_v25, %v433_v14  ;;  %v49_v29 = vshrl.u32 %v399_v28, %v433_v14 }
  0x86   :  { %v52_v32 = vshrl.u32 %v400_v31, %v433_v14  ;;  %vm56_vm3 = vcmp.lt.s32.totalorder %v435_v16, 3  ;;  %vm55_vm4 = vcmp.lt.s32.totalorder %v435_v16, 2  ;;  %v38_v13 = vshrl.u32 %v395_v17, %v433_v14 }
  0x87   :  { %v41_v33 = vor.u32 %v40_v21, %v39_v18  ;;  %v44_v34 = vor.u32 %v43_v23, %v42_v20  ;;  %v47_v35 = vor.u32 %v46_v26, %v45_v24  ;;  %v50_v36 = vor.u32 %v49_v29, %v48_v27 }
  0x88   :  { %v53_v37 = vor.u32 %v52_v32, %v51_v30 }
  0x89   :  { %v62_v39 = vsel %vm54_vm1, %v41_v33, %v44_v34  ;;  %v66_v40 = vsel %vm54_vm1, %v44_v34, %v47_v35  ;;  %v63_v41 = vsel %vm57_vm2, %v50_v36, 920167782  ;;  %v59_v10 = vsel %vm57_vm2, %v47_v35, 2102212464 }
  0x8a   :  { %v67_v42 = vsel %vm57_vm2, %v53_v37, 1326507024  ;;  %v64_v43 = vsel %vm56_vm3, %v47_v35, %v63_v41  ;;  %v58_v22 = vsel %vm54_vm1, %v38_v13, %v41_v33  ;;  %v60_v23 = vsel %vm56_vm3, %v44_v34, %v59_v10 }
  0x8b   :  { %v68_v44 = vsel %vm56_vm3, %v50_v36, %v67_v42  ;;  %v65_v45 = vsel %vm55_vm4, %v62_v39, %v64_v43  ;;  %v61_v14 = vsel %vm55_vm4, %v58_v22, %v60_v23 }
  0x8c   :  { %v69_v46 = vsel %vm55_vm4, %v66_v40, %v68_v44  ;;  %v95_v51 = vand.u32 65535, %v65_v45  ;;  %v96_v52 = vshrl.u32 %v65_v45, 16  ;;  %v115_v31 = vmul.u32 %v444_v38, %v61_v14 }
  0x8d   :  { %v73_v49 = vand.u32 65535, %v69_v46  ;;  %v74_v50 = vshrl.u32 %v69_v46, 16 }
  0x8e   :  { %v98_v55 = vmul.u32 %v96_v52, %v71_v47  ;;  %v99_v56 = vmul.u32 %v95_v51, %v72_v48  ;;  %v97_v60 = vmul.u32 %v95_v51, %v71_v47  ;;  %v100_v0 = vmul.u32 %v96_v52, %v72_v48 }
  0x8f   :  { %v76_v53 = vmul.u32 %v74_v50, %v71_v47  ;;  %v77_v54 = vmul.u32 %v73_v49, %v72_v48  ;;  %v75_v57 = vmul.u32 %v73_v49, %v71_v47  ;;  %v78_v59 = vmul.u32 %v74_v50, %v72_v48 }
  0x90   :  { %v101_v61 = vshll.u32 %v98_v55, 16  ;;  %v103_v4 = vshll.u32 %v99_v56, 16  ;;  %v102_v20 = vshrl.u32 %v98_v55, 16  ;;  %v104_v26 = vshrl.u32 %v99_v56, 16 }
  0x91   :  { %v79_v58 = vshll.u32 %v76_v53, 16  ;;  %v81_v62 = vshll.u32 %v77_v54, 16  ;;  %v80_v15 = vshrl.u32 %v76_v53, 16  ;;  %v82_v24 = vshrl.u32 %v77_v54, 16 }
  0x92   :  { %vm105_vm6 = vc.u32 %v97_v60, %v101_v61  ;;  %v107_v6 = vadd.s32 %v101_v61, %v97_v60 }
  0x93   :  { %vm83_vm5 = vc.u32 %v75_v57, %v79_v58  ;;  %v85_v63 = vadd.s32 %v79_v58, %v75_v57  ;;  %v106_v8 = vsel %vm105_vm6, 1, %v394_v1  ;;  %vm165_vm6 = vweird.f32 %v427_v5 }
  0x94   :  { %v84_v3 = vsel %vm83_vm5, 1, %v394_v1  ;;  %v108_v12 = vadd.s32 %v106_v8, %v100_v0  ;;  %vm109_vm8 = vc.u32 %v107_v6, %v103_v4  ;;  %v111_v29 = vadd.s32 %v107_v6, %v103_v4 }
  0x95   :  { %v86_v7 = vadd.s32 %v84_v3, %v78_v59  ;;  %vm87_vm7 = vc.u32 %v85_v63, %v81_v62  ;;  %v110_v19 = vsel %vm109_vm8, 1, %v394_v1 }
  0x96   :  { %v88_v11 = vsel %vm87_vm7, 1, %v394_v1  ;;  %v112_v21 = vadd.s32 %v110_v19, %v108_v12  ;;  %vm335_vm7 = vcmask 261120  }
  0x97   :  { %v90_v18 = vadd.s32 %v88_v11, %v86_v7 }
  0x98   :  { %v113_v27 = vadd.s32 %v112_v21, %v102_v20 }
  0x99   :  { %v91_v25 = vadd.s32 %v90_v18, %v80_v15  ;;  %v332_v18 = vperm.slane %v331_v9, 1 }
  0x9a   :  { %v114_v17 = vadd.s32 %v113_v27, %v104_v26 }
  0x9b   :  { %v92_v28 = vadd.s32 %v91_v25, %v82_v24  ;;  %vm488_vm2 = vcmp.eq.s32.totalorder %v332_v18, 1 }
  0x9c   :  { %v118_v30 = vadd.s32 1, %v114_v17 }
  0x9d   :  { %vm117_vm9 = vc.u32 %v92_v28, %v111_v29  ;;  %v116_v16 = vadd.s32 %v111_v29, %v92_v28 }
  0x9e   :  { %v119_v32 = vsel %vm117_vm9, %v118_v30, %v114_v17 }
  0x9f   :  { %v120_v35 = vadd.s32 %v119_v32, %v115_v31 }
  0xa1   :  { %v121_v33 = vadd.s32 536870912, %v120_v35 }
  0xa3   :  { %v122_v36 = vshrl.u32 %v121_v33, 30 }
  0xa5   :  { %v123_v37 = vshll.u32 %v122_v36, 30  ;;  %v146_v56 = vsub.s32 4, %v122_v36 }
  0xa7   :  { %v124_v34 = vsub.s32 %v120_v35, %v123_v37  ;;  %v147_v61 = vsel %vm24_vm12, %v146_v56, %v122_v36 }
  0xa8   :  { %v149_v3 = vsel %vm23_vm13, 0, %v147_v61 }
  0xa9   :  { %vm125_vm10 = vcmp.lt.s32.totalorder %v124_v34, 0  ;;  %v126_v39 = vsub.s32 0, %v124_v34  ;;  %v320_v8 = vadd.s32 3, %v149_v3  ;;  %v166_v15 = vand.u32 3, %v149_v3 }
  0xab   :  { %v127_v40 = vsel %vm125_vm10, %v126_v39, %v124_v34  ;;  %v321_v19 = vand.u32 3, %v320_v8  ;;  %vm167_vm15 = vcmp.lt.s32.totalorder %v166_v15, 2  ;;  %vm168_vm0 = vcmp.eq.s32.totalorder %v166_v15, 0 }
  0xac   :  { %v128_v41 = vclz %v127_v40  ;;  %vm171_vm1 = vcmp.eq.s32.totalorder %v166_v15, 2 }
  0xad   :  { %vm322_vm3 = vcmp.lt.s32.totalorder %v321_v19, 2  ;;  %vm323_vm4 = vcmp.eq.s32.totalorder %v321_v19, 0  ;;  %vm326_vm5 = vcmp.eq.s32.totalorder %v321_v19, 2 }
  0xae   :  { %v354_v42 = vadd.s32 4294967294, %v128_v41 }
  0xb0   :  { %vm355_vm11 = vcmp.lt.s32.totalorder %v354_v42, 0 }
  0xb1   :  { %v131_v43 = vsel %vm355_vm11, 0, %v354_v42 }
  0xb2   :  { %v132_v44 = vsub.s32 32, %v131_v43  ;;  %v136_v45 = vsub.s32 4294967266, %v131_v43  ;;  %v133_v46 = vshll.u32 %v124_v34, %v131_v43 }
  0xb4   :  { %v134_v47 = vshrl.u32 %v116_v16, %v132_v44  ;;  %v137_v48 = vadd.s32 127, %v136_v45 }
  0xb6   :  { %v135_v38 = vor.u32 %v134_v47, %v133_v46  ;;  %v138_v49 = vshll.u32 %v137_v48, 23 }
  0xb8   :  { %v139_v50 = vor.u32 4788187, %v138_v49  ;;  %v142_v52 = vcvt.s32.f32 %v135_v38 }
  0xba   :  { %v140_v51 = vand.u32 2147483647, %v139_v50 }
  0xbc   :  { %v143_v53 = vmul.f32 %v142_v52, %v140_v51 }
  0xbe   :  { %v144_v54 = vxor.u32 2147483648, %v143_v53 }
  0xc0   :  { %v145_v55 = vsel %vm24_vm12, %v144_v54, %v143_v53 }
  0xc1   :  { %v148_v57 = vsel %vm23_vm13, %v427_v5, %v145_v55 }
  0xc2   :  { %v150_v58 = vmul.f32 %v148_v57, %v148_v57 }
  0xc4   :  { %v158_v59 = vmul.f32 -0.00019511016, %v150_v58  ;;  %v151_v60 = vmul.f32 -0.001358992, %v150_v58 }
  0xc6   :  { %v159_v62 = vadd.f32 0.008332121, %v158_v59  ;;  %v152_v63 = vadd.f32 0.041655596, %v151_v60 }
  0xc8   :  { %v160_v0 = vmul.f32 %v159_v62, %v150_v58  ;;  %v153_v4 = vmul.f32 %v152_v63, %v150_v58 }
  0xca   :  { %v161_v6 = vadd.f32 -0.16666654, %v160_v0  ;;  %v154_v7 = vadd.f32 -0.4999988, %v153_v4 }
  0xcc   :  { %v162_v10 = vmul.f32 %v161_v6, %v150_v58  ;;  %v155_v11 = vmul.f32 %v154_v7, %v150_v58 }
  0xce   :  { %v163_v12 = vadd.f32 1.0, %v162_v10  ;;  %v156_v13 = vadd.f32 1.0, %v155_v11 }
  0xd0   :  { %v164_v20 = vmul.f32 %v163_v12, %v148_v57  ;;  %v172_v21 = vxor.u32 2147483648, %v156_v13 }
  0xd2   :  { %v169_v22 = vxor.u32 2147483648, %v164_v20  ;;  %v173_v23 = vsel %vm171_vm1, %v172_v21, %v164_v20  ;;  %v328_v25 = vsel %vm326_vm5, %v172_v21, %v164_v20 }
  0xd4   :  { %v170_v1 = vsel %vm168_vm0, %v156_v13, %v169_v22  ;;  %v325_v24 = vsel %vm323_vm4, %v156_v13, %v169_v22 }
  0xd5   :  { %v174_v26 = vsel %vm167_vm15, %v170_v1, %v173_v23  ;;  %v329_v27 = vsel %vm322_vm3, %v325_v24, %v328_v25 }
  0xd6   :  { %v175_v28 = vsel %vm165_vm6, nan, %v174_v26  ;;  %v330_v29 = vsel %vm165_vm6, nan, %v329_v27 }
  0xd7   :  { %v334_v14 = vsel %vm488_vm2, %v175_v28, %v330_v29 }
  0xd8   :  { %336 = vst.msk [vmem:[#allocation2] sm:$0xff] %vm335_vm7, %v334_v14 }
  0xd9   :  { %347 = dma.vmem_to_hbm [thread:$0]  %s343_s1, 128, %s345_s15, [#allocation3]  }
  0xda   :  { %392 = dma.done.wait [#allocation3], 128  }
  0xdb   :  { %393 = vsyncadd [#allocation3], 4294967168 }
  0xdc   :  { %352 = vsyncpa [#allocation3], 1 }

</bundles_post_ra>
